<compile_context>
chip_gen: v7x
topology: tpu7x:2x2x1
jax: 0.10.0
libtpu: 0.0.40
codegen_flags: <defaults>
</compile_context>

<pallas_src>
from functools import partial

import jax
import jax.numpy as jnp
from jax.experimental import pallas as pl
from jax.experimental.pallas import tpu as pltpu


def _round_up(x, n):
    return ((x + n - 1) // n) * n


def _tanh_dtype():
    """bf16 VPU/EUP exists on v6e/v7x; keep f32 transcendentals on v5e and older."""
    try:
        kind = jax.devices()[0].device_kind.lower()
    except Exception:
        return jnp.float32
    for old in ("v2", "v3", "v4", "v5"):
        if old in kind:
            return jnp.float32
    return jnp.bfloat16


def gmu_kernel(a_ref, w_att_ref, w_dense_ref, b_dense_ref, out_ref, *, tanh_dtype):
    # a_ref: (M, H, TB) storage dtype (bf16); batch on lanes, H on sublanes, M leading.
    x = a_ref[...]                                   # (M, H, TB)
    w_att = w_att_ref[...]                           # (H, 1) f32
    w_dense = w_dense_ref[...]                       # (H, 2) f32

    # --- attention scores: scores[m, b] = sum_h A[m, h, b] * w_att[h] (f32 accumulate) ---
    scores = jnp.sum(x.astype(jnp.float32) * w_att[None, :, :], axis=1)        # (M, TB)

    # --- softmax over M (per batch lane; bias already cancelled by the max-shift) --------
    scores = scores - jnp.max(scores, axis=0, keepdims=True)
    e = jnp.exp(scores)
    att = e * pl.reciprocal(jnp.sum(e, axis=0, keepdims=True), approx=True)    # (M, TB)

    # --- tanh gating (bf16 on v6e/v7x, f32 on v5e); pooled accumulated in f32 ------------
    t = jnp.tanh(x.astype(tanh_dtype))                                         # (M, H, TB)
    g = att.astype(tanh_dtype)[:, None, :] * t                                 # (M, H, TB)
    pooled = jnp.sum(g.astype(jnp.float32), axis=0)                            # (H, TB)

    # --- H -> 2 classifier head: lane-broadcast weight column + sublane reduce over H ----
    logit0 = jnp.sum(pooled * w_dense[:, 0:1], axis=0, keepdims=True) + b_dense_ref[0, 0]
    logit1 = jnp.sum(pooled * w_dense[:, 1:2], axis=0, keepdims=True) + b_dense_ref[0, 1]
    out_ref[0:1, :] = logit0.astype(out_ref.dtype)   # lane-dense (2, TB) writes, no concat
    out_ref[1:2, :] = logit1.astype(out_ref.dtype)


def gmu_forward(A, w_att, b_att, w_dense, b_dense, *, batch_tile=2048):
    """A: (B, M, H) (bf16 storage recommended).  w_att: (1, H), b_att: (1, 1) [ignored:
    softmax no-op], w_dense: (2, H), b_dense: (1, 2).  Returns logits (B, 2) f32."""
    del b_att  # per-row constant added before a softmax over M is a mathematical no-op
    B, M, H = A.shape

    # Batch-on-lanes layout for the kernel; tiny weight relayouts happen once in XLA.
    A_t = jnp.transpose(A, (1, 2, 0))          # (M, H, B)
    w_att_t = jnp.reshape(w_att, (H, 1)).astype(jnp.float32)
    w_dense_t = jnp.transpose(w_dense).astype(jnp.float32)   # (H, 2)
    b_dense_s = jnp.reshape(b_dense, (1, 2)).astype(jnp.float32)

    # Tile selection: whole batch for small B; otherwise lane-aligned (multiple of 128)
    # tiles capped at `batch_tile`, always giving >= 2 grid steps (v7x megacore).
    if B <= 256:
        TB = B
    else:
        TB = min(batch_tile, _round_up(pl.cdiv(B, 2), 128))
    grid = (pl.cdiv(B, TB),)

    # VMEM budget sized to the tile (double-buffered bf16 block + f32 intermediates),
    # clamped so it also fits v7x's 64 MiB physical / 32 MiB scoped default.
    a_block_bytes = M * H * TB * A_t.dtype.itemsize
    vmem_limit = int(min(32 * 2**20, max(4 * 2**20,
                                         2 * a_block_bytes + 4 * M * H * TB * 4 + 2 * 2**20)))

    smem = pltpu.MemorySpace.SMEM
    out = pl.pallas_call(
        partial(gmu_kernel, tanh_dtype=_tanh_dtype()),
        out_shape=jax.ShapeDtypeStruct((2, B), jnp.float32),   # lane-dense logits
        grid=grid,
        in_specs=[
            pl.BlockSpec((M, H, TB), lambda i: (0, 0, i)),     # A, tiled over batch lanes
            pl.BlockSpec((H, 1), lambda i: (0, 0)),            # attention weight, replicated
            pl.BlockSpec((H, 2), lambda i: (0, 0)),            # dense weight, replicated
            pl.BlockSpec(memory_space=smem),                   # dense bias scalars in SMEM
        ],
        out_specs=pl.BlockSpec((2, TB), lambda i: (0, i)),
        compiler_params=pltpu.CompilerParams(
            dimension_semantics=("parallel",),                 # shards batch across TCs on v7x
            vmem_limit_bytes=vmem_limit,
        ),
    )(A_t, w_att_t, w_dense_t, b_dense_s)
    return out.T                                               # (B, 2) for callers


def gmu_reference(A, w_att, b_att, w_dense, b_dense):
    scores = jnp.einsum("bmh,h->bm", A, w_att[0]) + b_att[0, 0]
    att = jax.nn.softmax(scores, axis=-1)
    pooled = jnp.einsum("bm,bmh->bh", att, jnp.tanh(A))
    return pooled @ w_dense.T + b_dense


if __name__ == "__main__":
    B, M, H = 2, 8, 32   # batch=2, modalities/seq=8, hidden=32

    key = jax.random.PRNGKey(0)
    k_a, k_wa, k_ba, k_wd, k_bd = jax.random.split(key, 5)

    # A stored in bf16 (halves HBM traffic; biggest relative win on v5e's lower HBM BW).
    A = jax.random.normal(k_a, (B, M, H), dtype=jnp.float32).astype(jnp.bfloat16)
    # Synthetic params in the PyTorch Linear (out_features, in_features) layout.
    w_att = jax.random.normal(k_wa, (1, H), dtype=jnp.float32) * (1.0 / H ** 0.5)
    b_att = jax.random.normal(k_ba, (1, 1), dtype=jnp.float32) * 0.01
    w_dense = jax.random.normal(k_wd, (2, H), dtype=jnp.float32) * (1.0 / H ** 0.5)
    b_dense = jax.random.normal(k_bd, (1, 2), dtype=jnp.float32) * 0.01

    out = gmu_forward(A, w_att, b_att, w_dense, b_dense)
    out = jax.block_until_ready(out)

    ref = gmu_reference(A.astype(jnp.float32), w_att, b_att, w_dense, b_dense)
    assert out.shape == (B, 2)
    # Tolerance: approx-reciprocal softmax (~1e-3) plus bf16 tanh/gating on v6e/v7x.
    tol = 2e-2 if _tanh_dtype() == jnp.bfloat16 else 3e-3
    assert jnp.allclose(out, ref, atol=tol, rtol=tol), (out, ref)

    print("KERNEL_OK")
</pallas_src>

<mosaic_0001>
module attributes {stable_mosaic.version = 11 : i64} {
  func.func @gmu_kernel(%arg0: i32, %arg1: memref<8x32x2xbf16, #tpu.memory_space<vmem>>, %arg2: memref<32x1xf32, #tpu.memory_space<vmem>>, %arg3: memref<32x2xf32, #tpu.memory_space<vmem>>, %arg4: memref<1x2xf32, #tpu.memory_space<smem>>, %arg5: memref<2x2xf32, #tpu.memory_space<vmem>>) attributes {dimension_semantics = [#tpu.dimension_semantics<parallel>], iteration_bounds = array<i64: 1>, scalar_prefetch = 0 : i64, scratch_operands = 0 : i64, tpu.core_type = #tpu.core_type<tc>, window_params = [{transform_indices = @transform_0, window_bounds = array<i64: 8, 32, 2>}, {pipeline_mode = #tpu.pipeline_mode<synchronous>, transform_indices = @transform_1, window_bounds = array<i64: 32, 1>}, {pipeline_mode = #tpu.pipeline_mode<synchronous>, transform_indices = @transform_2, window_bounds = array<i64: 32, 2>}, {transform_indices = @transform_3, window_bounds = array<i64: 1, 2>}, {transform_indices = @transform_4, window_bounds = array<i64: 2, 2>}]} {
    %c0 = arith.constant 0 : index
    %c0_0 = arith.constant 0 : index
    %c0_1 = arith.constant 0 : index
    %0 = vector.load %arg1[%c0, %c0_0, %c0_1] : memref<8x32x2xbf16, #tpu.memory_space<vmem>>, vector<8x32x2xbf16>
    %c0_2 = arith.constant 0 : index
    %c0_3 = arith.constant 0 : index
    %1 = vector.load %arg2[%c0_2, %c0_3] : memref<32x1xf32, #tpu.memory_space<vmem>>, vector<32x1xf32>
    %c0_4 = arith.constant 0 : index
    %c0_5 = arith.constant 0 : index
    %2 = vector.load %arg3[%c0_4, %c0_5] : memref<32x2xf32, #tpu.memory_space<vmem>>, vector<32x2xf32>
    %3 = arith.extf %0 : vector<8x32x2xbf16> to vector<8x32x2xf32>
    %4 = vector.shape_cast %1 : vector<32x1xf32> to vector<1x32x1xf32>
    %5 = vector.broadcast %4 : vector<1x32x1xf32> to vector<8x32x2xf32>
    %6 = arith.mulf %3, %5 : vector<8x32x2xf32>
    %cst = arith.constant dense<0.000000e+00> : vector<8x2xf32>
    %7 = vector.multi_reduction <add>, %6, %cst [1] : vector<8x32x2xf32> to vector<8x2xf32>
    %cst_6 = arith.constant dense<0xFF800000> : vector<2xf32>
    %8 = vector.multi_reduction <maximumf>, %7, %cst_6 [0] : vector<8x2xf32> to vector<2xf32>
    %9 = vector.shape_cast %8 : vector<2xf32> to vector<1x2xf32>
    %10 = vector.broadcast %9 : vector<1x2xf32> to vector<8x2xf32>
    %11 = arith.subf %7, %10 : vector<8x2xf32>
    %12 = math.exp %11 : vector<8x2xf32>
    %cst_7 = arith.constant dense<0.000000e+00> : vector<2xf32>
    %13 = vector.multi_reduction <add>, %12, %cst_7 [0] : vector<8x2xf32> to vector<2xf32>
    %14 = vector.shape_cast %13 : vector<2xf32> to vector<1x2xf32>
    %15 = tpu.reciprocal %14 {approx = true} : vector<1x2xf32> -> vector<1x2xf32>
    %16 = vector.broadcast %15 : vector<1x2xf32> to vector<8x2xf32>
    %17 = arith.mulf %12, %16 : vector<8x2xf32>
    %18 = math.tanh %0 : vector<8x32x2xbf16>
    %19 = arith.truncf %17 : vector<8x2xf32> to vector<8x2xbf16>
    %20 = vector.shape_cast %19 : vector<8x2xbf16> to vector<8x1x2xbf16>
    %21 = vector.broadcast %20 : vector<8x1x2xbf16> to vector<8x32x2xbf16>
    %22 = arith.mulf %21, %18 : vector<8x32x2xbf16>
    %23 = arith.extf %22 : vector<8x32x2xbf16> to vector<8x32x2xf32>
    %cst_8 = arith.constant dense<0.000000e+00> : vector<32x2xf32>
    %24 = vector.multi_reduction <add>, %23, %cst_8 [0] : vector<8x32x2xf32> to vector<32x2xf32>
    %25 = vector.extract_strided_slice %2 {offsets = [0, 0], sizes = [32, 1], strides = [1, 1]} : vector<32x2xf32> to vector<32x1xf32>
    %26 = vector.broadcast %25 : vector<32x1xf32> to vector<32x2xf32>
    %27 = arith.mulf %24, %26 : vector<32x2xf32>
    %cst_9 = arith.constant dense<0.000000e+00> : vector<2xf32>
    %28 = vector.multi_reduction <add>, %27, %cst_9 [0] : vector<32x2xf32> to vector<2xf32>
    %29 = vector.shape_cast %28 : vector<2xf32> to vector<1x2xf32>
    %c0_10 = arith.constant 0 : index
    %c0_11 = arith.constant 0 : index
    %30 = memref.load %arg4[%c0_10, %c0_11] : memref<1x2xf32, #tpu.memory_space<smem>>
    %31 = vector.broadcast %30 : f32 to vector<1x2xf32>
    %32 = arith.addf %29, %31 : vector<1x2xf32>
    %33 = vector.extract_strided_slice %2 {offsets = [0, 1], sizes = [32, 1], strides = [1, 1]} : vector<32x2xf32> to vector<32x1xf32>
    %34 = vector.broadcast %33 : vector<32x1xf32> to vector<32x2xf32>
    %35 = arith.mulf %24, %34 : vector<32x2xf32>
    %cst_12 = arith.constant dense<0.000000e+00> : vector<2xf32>
    %36 = vector.multi_reduction <add>, %35, %cst_12 [0] : vector<32x2xf32> to vector<2xf32>
    %37 = vector.shape_cast %36 : vector<2xf32> to vector<1x2xf32>
    %c0_13 = arith.constant 0 : index
    %c1 = arith.constant 1 : index
    %38 = memref.load %arg4[%c0_13, %c1] : memref<1x2xf32, #tpu.memory_space<smem>>
    %39 = vector.broadcast %38 : f32 to vector<1x2xf32>
    %40 = arith.addf %37, %39 : vector<1x2xf32>
    %c0_14 = arith.constant 0 : index
    %c0_15 = arith.constant 0 : index
    %41 = vector.load %arg5[%c0_14, %c0_15] : memref<2x2xf32, #tpu.memory_space<vmem>>, vector<1x2xf32>
    tpu.vector_store %arg5[%c0_14, %c0_15], %32 {strides = array<i32>} : memref<2x2xf32, #tpu.memory_space<vmem>>, vector<1x2xf32>,
    %c1_16 = arith.constant 1 : index
    %c0_17 = arith.constant 0 : index
    %42 = vector.load %arg5[%c1_16, %c0_17] : memref<2x2xf32, #tpu.memory_space<vmem>>, vector<1x2xf32>
    tpu.vector_store %arg5[%c1_16, %c0_17], %40 {strides = array<i32>} : memref<2x2xf32, #tpu.memory_space<vmem>>, vector<1x2xf32>,
    return
  }
  func.func @transform_0(%arg0: i32) -> (i32, i32, i32) {
    %c0_i32 = arith.constant 0 : i32
    %c0_i32_0 = arith.constant 0 : i32
    %c0_i32_1 = arith.constant 0 : i32
    return %c0_i32, %c0_i32_0, %arg0 : i32, i32, i32
  }
  func.func @transform_1(%arg0: i32) -> (i32, i32) {
    %c0_i32 = arith.constant 0 : i32
    %c0_i32_0 = arith.constant 0 : i32
    %c0_i32_1 = arith.constant 0 : i32
    return %c0_i32, %c0_i32_0 : i32, i32
  }
  func.func @transform_2(%arg0: i32) -> (i32, i32) {
    %c0_i32 = arith.constant 0 : i32
    %c0_i32_0 = arith.constant 0 : i32
    %c0_i32_1 = arith.constant 0 : i32
    return %c0_i32, %c0_i32_0 : i32, i32
  }
  func.func @transform_3(%arg0: i32) -> (i32, i32) {
    %c0_i32 = arith.constant 0 : i32
    %c0_i32_0 = arith.constant 0 : i32
    %c0_i32_1 = arith.constant 0 : i32
    return %c0_i32, %c0_i32_0 : i32, i32
  }
  func.func @transform_4(%arg0: i32) -> (i32, i32) {
    %c0_i32 = arith.constant 0 : i32
    %c0_i32_0 = arith.constant 0 : i32
    return %c0_i32, %arg0 : i32, i32
  }
}

</mosaic_0001>

<bundles_post_ra>
// kernel: tpu_custom_call.1
= control target key start
LH: loop header
LB: loop body
LE: loop exit
PB: predicated region body
PF: predicated region fallthrough
CT: control target
= control target key end

     0   :  { %9 = vsyncpa [#allocation4], 0  ;;  %s1423_s0 = inlined_call_operand.vmem [shape: bf16[8,32,2], index: 0, kind: input, shape index: {}]   ;;  %s1424_s1 = inlined_call_operand.vmem [shape: f32[32,1], index: 1, kind: input, shape index: {}]   ;;  %s1425_s2 = inlined_call_operand.vmem [shape: f32[32,2], index: 2, kind: input, shape index: {}]   ;;  %s1426_s3 = inlined_call_operand.vmem [shape: f32[1,2], index: 3, kind: input, shape index: {}]   ;;  %s1427_s4 = inlined_call_operand.hbm [shape: f32[2,2], index: 4, kind: output, shape index: {}]  }
   0x1   :  { %10 = vsyncpa [#allocation3], 0  ;;  %s23_s17 = sshll.u32 %s1426_s3, 4  ;;  %s24_s17 = int_to_ptr.vmem [resolvable:$true] %s23_s17 }
   0x2   :  { %s851_s18 = scalar_lea.vmem %s24_s17, 16  ;;  %p856_p1 = scmp.lt.s32.totalorder %s24_s17, %s24_s17 }
   0x3   :  { %p852_p0 = scmp.ne.s32.totalorder %s24_s17, %s851_s18  ;;  %p857_p2 = scmp.lt.s32.totalorder %s851_s18, %s851_s18 }
   0x5   :  { %p858_p3 = por %p857_p2, %p856_p1 }
   0x7   :  { %p859_p4 = pnand %p858_p3, %p852_p0 }
   0x9   :  { %862 = shalt.err (!%p859_p4)
}
   0xa   :  { %s889_s19 = smov [#allocation2]  }
   0xb   :  { %26 = dma.vmem_to_smem %s24_s17, 16, %s889_s19, [#allocation4]  }
   0xc   :  { %885 = dma.done.wait [#allocation4], 16  }
   0xd   :  { %886 = vsyncadd [#allocation4], 4294967280 }
   0xe   :  { %30 = sfence }
   0xf   :  { %v65_v0 = vld [vmem:[%s1424_s1 + $0x10] sm:$0xff]  ;;  %v63_v1 = vld [vmem:[%s1424_s1] sm:$0xff]  ;;  %v890_v2 = vmov 0   ;;  %v66_v3 = vld [vmem:[%s1424_s1 + $0x18] sm:$0xff]  ;;  %v891_v7 = vmov 1   ;;  %vm155_vm0 = vcmask 15360  }
  0x10   :  { %765 = vset.pattern.permute.xlu1 %v890_v2  ;;  %764 = vset.pattern.permute.xlu0 %v890_v2  ;;  %v64_v4 = vld [vmem:[%s1424_s1 + $0x8] sm:$0xff]  ;;  %v67_v6 = vld [vmem:[%s1425_s2] sm:$0xff]  ;;  %v69_v8 = vld [vmem:[%s1425_s2 + $0x10] sm:$0xff]  ;;  %vm308_vm1 = vcmask 1041409   ;;  %vm311_vm2 = vcmask 1042434   ;;  %vm314_vm3 = vcmask 1043459  }
  0x11   :  { %115 = vperm.xlu1 %765, %v65_v0   ;;  %105 = vperm.xlu0 %764, %v63_v1   ;;  %v68_v5 = vld [vmem:[%s1425_s2 + $0x8] sm:$0xff]  ;;  %v70_v9 = vld [vmem:[%s1425_s2 + $0x18] sm:$0xff]  ;;  %v984_v16 = vld [vmem:[%s1423_s0] sm:$0xf]  ;;  %vm317_vm4 = vcmask 1044484   ;;  %vm320_vm5 = vcmask 1045509  }
  0x12   :  { %v948_v10 = vld [vmem:[%s1423_s0 + $0x8] sm:$0xf]  ;;  %v953_v11 = vld [vmem:[%s1423_s0 + $0x18] sm:$0xf]  ;;  %v989_v17 = vld [vmem:[%s1423_s0 + $0x10] sm:$0xf] }
  0x13   :  { %769 = vtanh.bf16 %v948_v10  ;;  %v959_v12 = vld [vmem:[%s1423_s0 + $0x28] sm:$0xf]  ;;  %v965_v13 = vld [vmem:[%s1423_s0 + $0x38] sm:$0xf]  ;;  %v995_v18 = vld [vmem:[%s1423_s0 + $0x20] sm:$0xf]  ;;  %v75_v0 = vunpack.c.l.bf16 %v989_v17 }
  0x14   :  { %771 = vtanh.bf16 %v953_v11  ;;  %v971_v14 = vld [vmem:[%s1423_s0 + $0x48] sm:$0xf]  ;;  %v977_v15 = vld [vmem:[%s1423_s0 + $0x58] sm:$0xf]  ;;  %v1001_v19 = vld [vmem:[%s1423_s0 + $0x30] sm:$0xf]  ;;  %v79_v61 = vunpack.c.l.bf16 %v995_v18 }
  0x15   :  { %120 = vperm.xlu1 %765, %v66_v3   ;;  %110 = vperm.xlu0 %764, %v64_v4   ;;  %773 = vtanh.bf16 %v959_v12  ;;  %v1007_v20 = vld [vmem:[%s1423_s0 + $0x40] sm:$0xf]  ;;  %v1013_v21 = vld [vmem:[%s1423_s0 + $0x50] sm:$0xf]  ;;  %v1022_v23 = vld [vmem:[%s1423_s0 + $0xc] sm:$0xf]  ;;  %v81_v3 = vunpack.c.l.bf16 %v959_v12  ;;  %v85_v4 = vunpack.c.l.bf16 %v965_v13  ;;  %v89_v1 = vunpack.c.l.bf16 %v971_v14 }
  0x16   :  { %775 = vtanh.bf16 %v965_v13  ;;  %v1030_v25 = vld [vmem:[%s1423_s0 + $0x4] sm:$0xf]  ;;  %v1037_v27 = vld [vmem:[%s1423_s0 + $0x14] sm:$0xf]  ;;  %v1077_v37 = vld [vmem:[%s1423_s0 + $0x1c] sm:$0xf]  ;;  %v71_v13 = vunpack.c.l.bf16 %v984_v16  ;;  %v83_v60 = vunpack.c.l.bf16 %v1001_v19 }
  0x17   :  { %777 = vtanh.bf16 %v971_v14  ;;  %v1045_v29 = vld [vmem:[%s1423_s0 + $0x24] sm:$0xf]  ;;  %v1053_v31 = vld [vmem:[%s1423_s0 + $0x34] sm:$0xf]  ;;  %v1085_v39 = vld [vmem:[%s1423_s0 + $0x2c] sm:$0xf]  ;;  %v78_v57 = vunpack.c.l.bf16 %v1077_v37 }
  0x18   :  { %779 = vtanh.bf16 %v977_v15  ;;  %v1061_v33 = vld [vmem:[%s1423_s0 + $0x44] sm:$0xf]  ;;  %v1069_v35 = vld [vmem:[%s1423_s0 + $0x54] sm:$0xf]  ;;  %v1093_v41 = vld [vmem:[%s1423_s0 + $0x3c] sm:$0xf]  ;;  %v82_v56 = vunpack.c.l.bf16 %v1085_v39 }
  0x19   :  { %656 = vperm.xlu1 %765, %v68_v5   ;;  %651 = vperm.xlu0 %764, %v67_v6   ;;  %781 = vtanh.bf16 %v984_v16  ;;  %v1101_v43 = vld [vmem:[%s1423_s0 + $0x4c] sm:$0xf]  ;;  %v1109_v45 = vld [vmem:[%s1423_s0 + $0x5c] sm:$0xf]  ;;  %v91_v16 = vunpack.c.l.bf16 %v1013_v21  ;;  %v86_v55 = vunpack.c.l.bf16 %v1093_v41  ;;  %vm323_vm6 = vcmask 1046534   ;;  %s759_s2 = sld [smem:[#allocation2 + $0x1]] }
  0x1a   :  { %783 = vtanh.bf16 %v989_v17  ;;  %v1196_v58 = vld [vmem:[%s1423_s0 + $0x6c] sm:$0xf]  ;;  %v1201_v14 = vld [vmem:[%s1423_s0 + $0x7c] sm:$0xf]  ;;  %vm326_vm7 = vcmask 1047559   ;;  %s892_s14 = smov [#allocation5]  }
  0x1b   :  { %785 = vtanh.bf16 %v995_v18  ;;  %s734_s15 = sshll.u32 %s892_s14, 4  ;;  %vm725_vm8 = vcmask 8192   ;;  %s735_s15 = int_to_ptr.vmem [resolvable:$true] %s734_s15 }
  0x1c   :  { %787 = vtanh.bf16 %v1001_v19  ;;  %v74_v19 = vunpack.c.l.bf16 %v1022_v23  ;;  %s863_s16 = scalar_lea.vmem %s735_s15, 32  ;;  %p868_p6 = scmp.lt.s32.totalorder %s735_s15, %s735_s15 }
  0x1d   :  { %766 = vset.pattern.permute.xlu0 %v891_v7  ;;  %767 = vset.pattern.permute.xlu1 %v891_v7  ;;  %789 = vtanh.bf16 %v1007_v20  ;;  %v1169_v7 = vld [vmem:[%s1423_s0 + $0x78] sm:$0xf]  ;;  %p864_p5 = scmp.ne.s32.totalorder %s735_s15, %s863_s16  ;;  %p869_p7 = scmp.lt.s32.totalorder %s863_s16, %s863_s16 }
  0x1e   :  { %690 = vperm.xlu0 %766, %v67_v6   ;;  %694 = vperm.xlu1 %767, %v68_v5   ;;  %v1016_v22 = vpop.eup %769  ;;  %791 = vtanh.bf16 %v1013_v21  ;;  %v1164_v6 = vld [vmem:[%s1423_s0 + $0x68] sm:$0xf]  ;;  %v1178_v5 = vld [vmem:[%s1423_s0 + $0x60] sm:$0xf]  ;;  %v101_v12 = vunpack.c.l.bf16 %v1169_v7  ;;  %v90_v21 = vunpack.c.l.bf16 %v1101_v43 }
  0x1f   :  { %1445 = vst [vmem:[#allocation8_spill] sm:$0xff] %v1016_v22  ;;  %v1024_v24 = vpop.eup %771  ;;  %793 = vtanh.bf16 %v1022_v23  ;;  %v95_v17 = vunpack.c.l.bf16 %v1178_v5  ;;  %v94_v23 = vunpack.c.l.bf16 %v1109_v45  ;;  %p870_p8 = por %p869_p7, %p868_p6 }
  0x20   :  { %1446 = vst [vmem:[#allocation9_spill] sm:$0xff] %v1024_v24  ;;  %v1032_v26 = vpop.eup %773  ;;  %795 = vtanh.bf16 %v1030_v25 }
  0x21   :  { %1447 = vst [vmem:[#allocation10_spill] sm:$0xff] %v1032_v26  ;;  %v1040_v28 = vpop.eup %775  ;;  %797 = vtanh.bf16 %v1037_v27  ;;  %p871_p9 = pnand %p870_p8, %p864_p5 }
  0x22   :  { %698 = vperm.xlu0 %766, %v69_v8   ;;  %768 = vset.pattern.permute.xlu1 %v890_v2  ;;  %1448 = vst [vmem:[#allocation11_spill] sm:$0xff] %v1040_v28  ;;  %v1048_v30 = vpop.eup %777  ;;  %799 = vtanh.bf16 %v1045_v29  ;;  %v1183_v2 = vld [vmem:[%s1423_s0 + $0x70] sm:$0xf]  ;;  %v88_v28 = vunpack.c.l.bf16 %v1061_v33 }
  0x23   :  { %661 = vperm.xlu1 %768, %v69_v8   ;;  %1449 = vst [vmem:[#allocation12_spill] sm:$0xff] %v1048_v30  ;;  %v1056_v32 = vpop.eup %779  ;;  %801 = vtanh.bf16 %v1053_v31  ;;  %v73_v8 = vunpack.c.l.bf16 %v948_v10  ;;  %v93_v10 = vunpack.c.l.bf16 %v977_v15  ;;  %v87_v15 = vunpack.c.l.bf16 %v1007_v20  ;;  %v1219_v20 = vld [vmem:[%s1423_s0 + $0x74] sm:$0xf] }
  0x24   :  { %1450 = vst [vmem:[#allocation13_spill] sm:$0xff] %v1056_v32  ;;  %v1064_v34 = vpop.eup %781  ;;  %803 = vtanh.bf16 %v1061_v33  ;;  %v99_v18 = vunpack.c.l.bf16 %v1183_v2  ;;  %v76_v32 = vunpack.c.l.bf16 %v1037_v27  ;;  %v84_v30 = vunpack.c.l.bf16 %v1053_v31 }
  0x25   :  { %v1072_v36 = vpop.eup %783  ;;  %805 = vtanh.bf16 %v1069_v35 }
  0x26   :  { %702 = vperm.xlu0 %766, %v70_v9   ;;  %v1080_v38 = vpop.eup %785  ;;  %807 = vtanh.bf16 %v1077_v37  ;;  %v98_v37 = vunpack.c.l.bf16 %v1196_v58 }
  0x27   :  { %666 = vperm.xlu1 %768, %v70_v9   ;;  %v1088_v40 = vpop.eup %787  ;;  %809 = vtanh.bf16 %v1085_v39  ;;  %v77_v9 = vunpack.c.l.bf16 %v953_v11  ;;  %v97_v11 = vunpack.c.l.bf16 %v1164_v6  ;;  %v102_v39 = vunpack.c.l.bf16 %v1201_v14 }
  0x28   :  { %v1096_v42 = vpop.eup %789  ;;  %811 = vtanh.bf16 %v1093_v41  ;;  %v72_v41 = vunpack.c.l.bf16 %v1030_v25 }
  0x29   :  { %1451 = vst [vmem:[#allocation14_spill] sm:$0xff] %v1096_v42  ;;  %v1104_v44 = vpop.eup %791  ;;  %813 = vtanh.bf16 %v1101_v43 }
  0x2a   :  { %1452 = vst [vmem:[#allocation15_spill] sm:$0xff] %v1104_v44  ;;  %v1112_v46 = vpop.eup %793  ;;  %815 = vtanh.bf16 %v1109_v45  ;;  %v100_v45 = vunpack.c.l.bf16 %v1219_v20 }
  0x2b   :  { %1453 = vst [vmem:[#allocation16_spill] sm:$0xff] %v1112_v46  ;;  %v1115_v47 = vpop.eup %795 }
  0x2c   :  { %v1117_v48 = vpop.eup %797 }
  0x2d   :  { %v1119_v49 = vpop.eup %799 }
  0x2e   :  { %v1121_v50 = vpop.eup %801 }
  0x2f   :  { %1454 = vst [vmem:[#allocation17_spill] sm:$0xff] %v1121_v50  ;;  %v1123_v51 = vpop.eup %803 }
  0x30   :  { %1455 = vst [vmem:[#allocation18_spill] sm:$0xff] %v1123_v51  ;;  %v1125_v52 = vpop.eup %805 }
  0x31   :  { %1456 = vst [vmem:[#allocation19_spill] sm:$0xff] %v1125_v52  ;;  %v1127_v53 = vpop.eup %807 }
  0x32   :  { %1457 = vst [vmem:[#allocation20_spill] sm:$0xff] %v1127_v53  ;;  %v1129_v54 = vpop.eup %809 }
  0x33   :  { %1458 = vst [vmem:[#allocation21_spill] sm:$0xff] %v1129_v54  ;;  %v1139_v59 = vpop.eup %811  ;;  %v92_v54 = vunpack.c.l.bf16 %v1069_v35 }
  0x34   :  { %1459 = vst [vmem:[#allocation22_spill] sm:$0xff] %v1139_v59  ;;  %v1145_v62 = vpop.eup %813 }
  0x35   :  { %1460 = vst [vmem:[#allocation23_spill] sm:$0xff] %v1145_v62  ;;  %v1147_v63 = vpop.eup %815  ;;  %v80_v62 = vunpack.c.l.bf16 %v1045_v29 }
  0x36   :  { %1461 = vst [vmem:[#allocation24_spill] sm:$0xff] %v1147_v63  ;;  %v1214_v63 = vld [vmem:[%s1423_s0 + $0x64] sm:$0xf]  ;;  %s686_s0 = sld [smem:[#allocation2]] }
  0x37   :  { %v96_v43 = vunpack.c.l.bf16 %v1214_v63 }
  0x90   :  { %v116_v59 = vpop.permute.xlu1 %115  ;;  %v106_v29 = vpop.permute.xlu0 %105 }
  0x91   :  { %v125_v26 = vmul.f32 %v116_v59, %v73_v8  ;;  %v129_v53 = vmul.f32 %v116_v59, %v77_v9  ;;  %v133_v24 = vmul.f32 %v116_v59, %v81_v3  ;;  %v137_v46 = vmul.f32 %v116_v59, %v85_v4 }
  0x92   :  { %v141_v25 = vmul.f32 %v116_v59, %v89_v1  ;;  %v145_v22 = vmul.f32 %v116_v59, %v93_v10  ;;  %v149_v27 = vmul.f32 %v116_v59, %v97_v11  ;;  %v153_v52 = vmul.f32 %v116_v59, %v101_v12 }
  0x93   :  { %v159_v31 = vsel %vm155_vm0, %v125_v26, 0.0  ;;  %v172_v44 = vsel %vm155_vm0, %v129_v53, 0.0  ;;  %v185_v33 = vsel %vm155_vm0, %v133_v24, 0.0  ;;  %v198_v35 = vsel %vm155_vm0, %v137_v46, 0.0 }
  0x94   :  { %v1238_v51 = vsel %vm155_vm0, %v141_v25, 0.0  ;;  %v1241_v8 = vsel %vm155_vm0, %v145_v22, 0.0  ;;  %v1244_v1 = vsel %vm155_vm0, %v149_v27, 0.0  ;;  %v1247_v59 = vsel %vm155_vm0, %v153_v52, 0.0  ;;  %v121_v11 = vpop.permute.xlu1 %120  ;;  %v111_v42 = vpop.permute.xlu0 %110 }
  0x95   :  { %v123_v3 = vmul.f32 %v106_v29, %v71_v13  ;;  %v127_v26 = vmul.f32 %v106_v29, %v75_v0  ;;  %v131_v4 = vmul.f32 %v106_v29, %v79_v61  ;;  %v135_v53 = vmul.f32 %v106_v29, %v83_v60 }
  0x96   :  { %v139_v9 = vmul.f32 %v106_v29, %v87_v15  ;;  %v143_v24 = vmul.f32 %v106_v29, %v91_v16  ;;  %v147_v10 = vmul.f32 %v106_v29, %v95_v17  ;;  %v151_v46 = vmul.f32 %v106_v29, %v99_v18 }
  0x97   :  { %v156_v12 = vsel %vm155_vm0, %v123_v3, 0.0  ;;  %v169_v22 = vsel %vm155_vm0, %v127_v26, 0.0  ;;  %v182_v25 = vsel %vm155_vm0, %v131_v4, 0.0  ;;  %v195_v27 = vsel %vm155_vm0, %v135_v53, 0.0 }
  0x98   :  { %v208_v52 = vsel %vm155_vm0, %v139_v9, 0.0  ;;  %v221_v13 = vsel %vm155_vm0, %v143_v24, 0.0  ;;  %v234_v61 = vsel %vm155_vm0, %v147_v10, 0.0  ;;  %v247_v60 = vsel %vm155_vm0, %v151_v46, 0.0 }
  0x99   :  { %v126_v0 = vmul.f32 %v121_v11, %v74_v19  ;;  %v130_v15 = vmul.f32 %v121_v11, %v78_v57  ;;  %v134_v16 = vmul.f32 %v121_v11, %v82_v56  ;;  %v138_v17 = vmul.f32 %v121_v11, %v86_v55 }
  0x9a   :  { %v142_v18 = vmul.f32 %v121_v11, %v90_v21  ;;  %v146_v29 = vmul.f32 %v121_v11, %v94_v23  ;;  %v150_v3 = vmul.f32 %v121_v11, %v98_v37  ;;  %v154_v26 = vmul.f32 %v121_v11, %v102_v39 }
  0x9b   :  { %v161_v4 = vsel %vm155_vm0, %v126_v0, 0.0  ;;  %v174_v53 = vsel %vm155_vm0, %v130_v15, 0.0  ;;  %v187_v9 = vsel %vm155_vm0, %v134_v16, 0.0  ;;  %v200_v24 = vsel %vm155_vm0, %v138_v17, 0.0 }
  0x9c   :  { %v213_v10 = vsel %vm155_vm0, %v142_v18, 0.0  ;;  %v226_v19 = vsel %vm155_vm0, %v146_v29, 0.0  ;;  %v239_v56 = vsel %vm155_vm0, %v150_v3, 0.0  ;;  %v252_v55 = vsel %vm155_vm0, %v154_v26, 0.0 }
  0x9d   :  { %v124_v57 = vmul.f32 %v111_v42, %v72_v41  ;;  %v128_v21 = vmul.f32 %v111_v42, %v76_v32  ;;  %v132_v23 = vmul.f32 %v111_v42, %v80_v62  ;;  %v136_v37 = vmul.f32 %v111_v42, %v84_v30 }
  0x9e   :  { %v140_v39 = vmul.f32 %v111_v42, %v88_v28  ;;  %v144_v46 = vmul.f32 %v111_v42, %v92_v54  ;;  %v148_v11 = vmul.f32 %v111_v42, %v96_v43  ;;  %v152_v0 = vmul.f32 %v111_v42, %v100_v45 }
  0x9f   :  { %v157_v15 = vsel %vm155_vm0, %v124_v57, 0.0  ;;  %v170_v16 = vsel %vm155_vm0, %v128_v21, 0.0  ;;  %v183_v17 = vsel %vm155_vm0, %v132_v23, 0.0  ;;  %v196_v18 = vsel %vm155_vm0, %v136_v37, 0.0 }
  0xa0   :  { %v158_v29 = vadd.f32 %v157_v15, %v156_v12  ;;  %v171_v3 = vadd.f32 %v170_v16, %v169_v22  ;;  %v184_v50 = vadd.f32 %v183_v17, %v182_v25  ;;  %v197_v26 = vadd.f32 %v196_v18, %v195_v27 }
  0xa1   :  { %v209_v32 = vsel %vm155_vm0, %v140_v39, 0.0  ;;  %v222_v30 = vsel %vm155_vm0, %v144_v46, 0.0  ;;  %v235_v28 = vsel %vm155_vm0, %v148_v11, 0.0  ;;  %v248_v42 = vsel %vm155_vm0, %v152_v0, 0.0 }
  0xa2   :  { %v160_v54 = vadd.f32 %v159_v31, %v158_v29  ;;  %v173_v62 = vadd.f32 %v172_v44, %v171_v3  ;;  %v186_v41 = vadd.f32 %v185_v33, %v184_v50  ;;  %v199_v43 = vadd.f32 %v198_v35, %v197_v26 }
  0xa3   :  { %v210_v45 = vadd.f32 %v209_v32, %v208_v52  ;;  %v223_v57 = vadd.f32 %v222_v30, %v221_v13  ;;  %v236_v21 = vadd.f32 %v235_v28, %v234_v61  ;;  %v249_v23 = vadd.f32 %v248_v42, %v247_v60 }
  0xa4   :  { %v162_v12 = vadd.f32 %v161_v4, %v160_v54  ;;  %v175_v22 = vadd.f32 %v174_v53, %v173_v62  ;;  %v188_v25 = vadd.f32 %v187_v9, %v186_v41  ;;  %v201_v27 = vadd.f32 %v200_v24, %v199_v43 }
  0xa5   :  { %v212_v37 = vadd.f32 %v1238_v51, %v210_v45  ;;  %v225_v39 = vadd.f32 %v1241_v8, %v223_v57  ;;  %v238_v46 = vadd.f32 %v1244_v1, %v236_v21  ;;  %v251_v11 = vadd.f32 %v1247_v59, %v249_v23 }
  0xa6   :  { %v163_v31 = vrot.slane %v162_v12, 4  ;;  %v176_v44 = vrot.slane %v175_v22, 4  ;;  %v189_v50 = vrot.slane %v188_v25, 4  ;;  %v202_v33 = vrot.slane %v201_v27, 4 }
  0xa7   :  { %v214_v35 = vadd.f32 %v213_v10, %v212_v37  ;;  %v227_v52 = vadd.f32 %v226_v19, %v225_v39  ;;  %v240_v13 = vadd.f32 %v239_v56, %v238_v46  ;;  %v253_v61 = vadd.f32 %v252_v55, %v251_v11 }
  0xa8   :  { %v164_v60 = vadd.f32 %v163_v31, %v162_v12  ;;  %v177_v4 = vadd.f32 %v176_v44, %v175_v22  ;;  %v190_v53 = vadd.f32 %v189_v50, %v188_v25  ;;  %v203_v9 = vadd.f32 %v202_v33, %v201_v27 }
  0xa9   :  { %v215_v24 = vrot.slane %v214_v35, 4  ;;  %v228_v51 = vrot.slane %v227_v52, 4  ;;  %v241_v0 = vrot.slane %v240_v13, 4  ;;  %v254_v8 = vrot.slane %v253_v61, 4 }
  0xaa   :  { %v165_v15 = vrot.slane %v164_v60, 2  ;;  %v178_v1 = vrot.slane %v177_v4, 2  ;;  %v191_v16 = vrot.slane %v190_v53, 2  ;;  %v204_v59 = vrot.slane %v203_v9, 2 }
  0xab   :  { %v216_v17 = vadd.f32 %v215_v24, %v214_v35  ;;  %v229_v18 = vadd.f32 %v228_v51, %v227_v52  ;;  %v242_v29 = vadd.f32 %v241_v0, %v240_v13  ;;  %v255_v3 = vadd.f32 %v254_v8, %v253_v61 }
  0xac   :  { %v166_v10 = vadd.f32 %v165_v15, %v164_v60  ;;  %v179_v19 = vadd.f32 %v178_v1, %v177_v4  ;;  %v192_v56 = vadd.f32 %v191_v16, %v190_v53  ;;  %v205_v55 = vadd.f32 %v204_v59, %v203_v9 }
  0xad   :  { %v217_v26 = vrot.slane %v216_v17, 2  ;;  %v230_v32 = vrot.slane %v229_v18, 2  ;;  %v243_v30 = vrot.slane %v242_v29, 2  ;;  %v256_v28 = vrot.slane %v255_v3, 2 }
  0xae   :  { %v167_v42 = vrot.slane %v166_v10, 1  ;;  %v180_v54 = vrot.slane %v179_v19, 1  ;;  %v193_v62 = vrot.slane %v192_v56, 1  ;;  %v206_v41 = vrot.slane %v205_v55, 1 }
  0xaf   :  { %v218_v43 = vadd.f32 %v217_v26, %v216_v17  ;;  %v231_v45 = vadd.f32 %v230_v32, %v229_v18  ;;  %v244_v57 = vadd.f32 %v243_v30, %v242_v29  ;;  %v257_v21 = vadd.f32 %v256_v28, %v255_v3 }
  0xb0   :  { %v168_v23 = vadd.f32 %v167_v42, %v166_v10  ;;  %v181_v12 = vadd.f32 %v180_v54, %v179_v19  ;;  %v194_v22 = vadd.f32 %v193_v62, %v192_v56  ;;  %v207_v25 = vadd.f32 %v206_v41, %v205_v55 }
  0xb1   :  { %v219_v27 = vrot.slane %v218_v43, 1  ;;  %v232_v37 = vrot.slane %v231_v45, 1  ;;  %v245_v39 = vrot.slane %v244_v57, 1  ;;  %v258_v46 = vrot.slane %v257_v21, 1 }
  0xb2   :  { %v260_v11 = vsel %vm155_vm0, %v168_v23, -inf  ;;  %v261_v31 = vsel %vm155_vm0, %v181_v12, -inf  ;;  %v262_v44 = vsel %vm155_vm0, %v194_v22, -inf  ;;  %v263_v50 = vsel %vm155_vm0, %v207_v25, -inf }
  0xb3   :  { %v220_v33 = vadd.f32 %v219_v27, %v218_v43  ;;  %v233_v35 = vadd.f32 %v232_v37, %v231_v45  ;;  %v246_v52 = vadd.f32 %v245_v39, %v244_v57  ;;  %v259_v13 = vadd.f32 %v258_v46, %v257_v21 }
  0xb5   :  { %v264_v61 = vsel %vm155_vm0, %v220_v33, -inf  ;;  %v266_v60 = vsel %vm155_vm0, %v233_v35, -inf  ;;  %v268_v4 = vsel %vm155_vm0, %v246_v52, -inf  ;;  %v270_v53 = vsel %vm155_vm0, %v259_v13, -inf }
  0xb6   :  { %v265_v9 = vmax.f32 %v260_v11, %v264_v61  ;;  %v267_v24 = vmax.f32 %v261_v31, %v266_v60  ;;  %v269_v51 = vmax.f32 %v262_v44, %v268_v4  ;;  %v271_v0 = vmax.f32 %v263_v50, %v270_v53 }
  0xb8   :  { %v272_v8 = vmax.f32 %v265_v9, %v267_v24  ;;  %v273_v15 = vmax.f32 %v269_v51, %v271_v0  ;;  %v337_v0 = vlaneseq }
  0xba   :  { %v274_v1 = vmax.f32 %v272_v8, %v273_v15  ;;  %v338_v8 = vshrl.u32 %v337_v0, 7 }
  0xbc   :  { %v275_v16 = vsub.f32 %v168_v23, %v274_v1  ;;  %v276_v59 = vsub.f32 %v181_v12, %v274_v1  ;;  %v277_v17 = vsub.f32 %v194_v22, %v274_v1  ;;  %v278_v18 = vsub.f32 %v207_v25, %v274_v1 }
  0xbd   :  { %v279_v29 = vsub.f32 %v220_v33, %v274_v1  ;;  %v280_v3 = vsub.f32 %v233_v35, %v274_v1  ;;  %v281_v56 = vsub.f32 %v246_v52, %v274_v1  ;;  %v282_v26 = vsub.f32 %v259_v13, %v274_v1 }
  0xbe   :  { %v283_v10 = vmul.f32 1.442695, %v275_v16  ;;  %v285_v19 = vmul.f32 1.442695, %v276_v59  ;;  %v287_v55 = vmul.f32 1.442695, %v277_v17 }
  0xbf   :  { %v289_v32 = vmul.f32 1.442695, %v278_v18  ;;  %v291_v30 = vmul.f32 1.442695, %v279_v29  ;;  %v293_v28 = vmul.f32 1.442695, %v280_v3 }
  0xc0   :  { %817 = vpow2.f32 %v283_v10  ;;  %v295_v42 = vmul.f32 1.442695, %v281_v56  ;;  %v297_v54 = vmul.f32 1.442695, %v282_v26  ;;  %v339_v16 = vsub.s32 0, %v338_v8 }
  0xc1   :  { %819 = vpow2.f32 %v285_v19 }
  0xc2   :  { %821 = vpow2.f32 %v287_v55 }
  0xc3   :  { %823 = vpow2.f32 %v289_v32 }
  0xc4   :  { %825 = vpow2.f32 %v291_v30 }
  0xc5   :  { %827 = vpow2.f32 %v293_v28 }
  0xc6   :  { %829 = vpow2.f32 %v295_v42 }
  0xc7   :  { %831 = vpow2.f32 %v297_v54 }
  0xc8   :  { %833 = vtanh.bf16 %v1178_v5 }
  0xc9   :  { %835 = vtanh.bf16 %v1214_v63 }
  0xca   :  { %v818_v62 = vpop.eup %817  ;;  %837 = vtanh.bf16 %v1183_v2 }
  0xcb   :  { %v820_v41 = vpop.eup %819  ;;  %839 = vtanh.bf16 %v1219_v20 }
  0xcc   :  { %v822_v43 = vpop.eup %821  ;;  %v307_v45 = vrot.slane %v820_v41, 7 }
  0xcd   :  { %v824_v57 = vpop.eup %823  ;;  %v310_v21 = vrot.slane %v822_v43, 6 }
  0xce   :  { %v826_v23 = vpop.eup %825  ;;  %v309_v12 = vsel %vm308_vm1, %v307_v45, %v818_v62  ;;  %v313_v22 = vrot.slane %v824_v57, 5 }
  0xcf   :  { %v828_v25 = vpop.eup %827  ;;  %v312_v27 = vsel %vm311_vm2, %v310_v21, %v309_v12  ;;  %v316_v37 = vrot.slane %v826_v23, 4 }
  0xd0   :  { %v830_v39 = vpop.eup %829  ;;  %v315_v46 = vsel %vm314_vm3, %v313_v22, %v312_v27  ;;  %v319_v11 = vrot.slane %v828_v25, 3 }
  0xd1   :  { %v832_v31 = vpop.eup %831  ;;  %v318_v44 = vsel %vm317_vm4, %v316_v37, %v315_v46  ;;  %v322_v50 = vrot.slane %v830_v39, 2 }
  0xd2   :  { %v321_v33 = vsel %vm320_vm5, %v319_v11, %v318_v44  ;;  %v325_v35 = vrot.slane %v832_v31, 1 }
  0xd3   :  { %v324_v52 = vsel %vm323_vm6, %v322_v50, %v321_v33  ;;  %v834_v15 = vpop.eup %833  ;;  %v1462_v50 = vcombine.low %v1064_v34, %v1115_v47  ;;  %v1470_v34 = vld [vmem:[#allocation15_spill] sm:$0xff] }
  0xd4   :  { %v327_v13 = vsel %vm326_vm7, %v325_v35, %v324_v52  ;;  %v836_v1 = vpop.eup %835  ;;  %v1463_v35 = vcombine.low %v1072_v36, %v1117_v48  ;;  %v1471_v47 = vld [vmem:[#allocation19_spill] sm:$0xff] }
  0xd5   :  { %v329_v61 = vsel %vm155_vm0, %v327_v13, 0.0  ;;  %v838_v59 = vpop.eup %837  ;;  %v755_v63 = vcombine.low %v834_v15, %v836_v1  ;;  %v1464_v13 = vcombine.low %v1080_v38, %v1119_v49  ;;  %v1472_v15 = vcombine.low %v1470_v34, %v1471_v47  ;;  %v1483_v34 = vld [vmem:[#allocation22_spill] sm:$0xff] }
  0xd6   :  { %v330_v60 = vrot.slane %v329_v61, 4  ;;  %v840_v17 = vpop.eup %839 }
  0xd7   :  { %v757_v2 = vcombine.low %v838_v59, %v840_v17 }
  0xd8   :  { %v331_v4 = vadd.f32 %v330_v60, %v329_v61  ;;  %v1465_v60 = vld [vmem:[#allocation17_spill] sm:$0xff] }
  0xda   :  { %v332_v53 = vrot.slane %v331_v4, 2 }
  0xdc   :  { %v333_v9 = vadd.f32 %v332_v53, %v331_v4  ;;  %v1466_v4 = vcombine.low %v1088_v40, %v1465_v60 }
  0xde   :  { %v334_v24 = vrot.slane %v333_v9, 1 }
  0xe0   :  { %v335_v51 = vadd.f32 %v334_v24, %v333_v9  ;;  %v1467_v24 = vld [vmem:[#allocation14_spill] sm:$0xff] }
  0xe2   :  { %841 = vrcp.f32 %v335_v51  ;;  %v1468_v51 = vld [vmem:[#allocation18_spill] sm:$0xff] }
  0xe3   :  { %843 = vtanh.bf16 %v1164_v6  ;;  %v1469_v0 = vcombine.low %v1467_v24, %v1468_v51  ;;  %v1480_v24 = vld [vmem:[#allocation21_spill] sm:$0xff] }
  0xe4   :  { %845 = vtanh.bf16 %v1196_v58 }
  0xe5   :  { %847 = vtanh.bf16 %v1169_v7 }
  0xe6   :  { %849 = vtanh.bf16 %v1201_v14 }
  0xec   :  { %v842_v18 = vpop.eup %841 }
  0xed   :  { %v340_v5 = vrot.slane %v842_v18, %v339_v16 }
  0xee   :  { %v1294_v37 = vpop.eup %843 }
  0xef   :  { %v341_v20 = vmul.f32 %v818_v62, %v340_v5  ;;  %v342_v29 = vmul.f32 %v820_v41, %v340_v5  ;;  %v343_v3 = vmul.f32 %v822_v43, %v340_v5  ;;  %v344_v10 = vmul.f32 %v824_v57, %v340_v5  ;;  %v1300_v44 = vpop.eup %845 }
  0xf0   :  { %v345_v19 = vmul.f32 %v826_v23, %v340_v5  ;;  %v346_v56 = vmul.f32 %v828_v25, %v340_v5  ;;  %v347_v55 = vmul.f32 %v830_v39, %v340_v5  ;;  %v348_v26 = vmul.f32 %v832_v31, %v340_v5  ;;  %v1314_v9 = vpop.eup %847 }
  0xf1   :  { %v381_v32 = vpack.c.bf16 %v341_v20, %v341_v20  ;;  %v382_v6 = vpack.c.bf16 %v342_v29, %v342_v29  ;;  %v383_v30 = vpack.c.bf16 %v343_v3, %v343_v3  ;;  %v384_v28 = vpack.c.bf16 %v344_v10, %v344_v10  ;;  %v850_v38 = vpop.eup %849 }
  0xf2   :  { %v385_v58 = vpack.c.bf16 %v345_v19, %v345_v19  ;;  %v386_v42 = vpack.c.bf16 %v346_v56, %v346_v56  ;;  %v387_v54 = vpack.c.bf16 %v347_v55, %v347_v55  ;;  %v388_v7 = vpack.c.bf16 %v348_v26, %v348_v26 }
  0xf3   :  { %v390_v45 = vpack.i.b16 %v381_v32, %v381_v32  ;;  %v397_v21 = vpack.i.b16 %v382_v6, %v382_v6  ;;  %v404_v12 = vpack.i.b16 %v383_v30, %v383_v30  ;;  %v411_v14 = vpack.i.b16 %v384_v28, %v384_v28 }
  0xf4   :  { %v418_v62 = vpack.i.b16 %v385_v58, %v385_v58  ;;  %v425_v41 = vpack.i.b16 %v386_v42, %v386_v42  ;;  %v432_v43 = vpack.i.b16 %v387_v54, %v387_v54  ;;  %v439_v57 = vpack.i.b16 %v388_v7, %v388_v7 }
  0xf5   :  { %v395_v23 = vrot.slane %v390_v45, %v339_v16  ;;  %v402_v22 = vrot.slane %v397_v21, %v339_v16  ;;  %v409_v25 = vrot.slane %v404_v12, %v339_v16  ;;  %v416_v27 = vrot.slane %v411_v14, %v339_v16 }
  0xf6   :  { %v423_v39 = vrot.slane %v418_v62, %v339_v16  ;;  %v430_v46 = vrot.slane %v425_v41, %v339_v16  ;;  %v1296_v11 = vrot.slane %v432_v43, %v339_v16  ;;  %v1298_v31 = vrot.slane %v439_v57, %v339_v16 }
  0xf7   :  { %v541_v33 = vmul.bf16 %v1462_v50, %v395_v23  ;;  %v543_v52 = vmul.bf16 %v1463_v35, %v402_v22  ;;  %v545_v61 = vmul.bf16 %v1464_v13, %v409_v25  ;;  %v547_v53 = vmul.bf16 %v1466_v4, %v416_v27  ;;  %v1474_v50 = vld [vmem:[#allocation16_spill] sm:$0xff] }
  0xf8   :  { %v549_v8 = vmul.bf16 %v1469_v0, %v423_v39  ;;  %v551_v1 = vmul.bf16 %v1472_v15, %v430_v46  ;;  %v553_v36 = vmul.bf16 %v755_v63, %v1296_v11  ;;  %v1324_v48 = vmul.bf16 %v757_v2, %v1298_v31  ;;  %v1477_v13 = vld [vmem:[#allocation20_spill] sm:$0xff] }
  0xf9   :  { %v558_v49 = vunpack.c.h.bf16 %v541_v33  ;;  %v562_v16 = vunpack.c.h.bf16 %v543_v52  ;;  %v566_v40 = vunpack.c.h.bf16 %v545_v61  ;;  %v570_v59 = vunpack.c.h.bf16 %v547_v53 }
  0xfa   :  { %v574_v17 = vunpack.c.h.bf16 %v549_v8  ;;  %v578_v18 = vunpack.c.h.bf16 %v551_v1  ;;  %v582_v29 = vunpack.c.h.bf16 %v553_v36  ;;  %v586_v3 = vunpack.c.h.bf16 %v1324_v48 }
  0xfb   :  { %v604_v5 = vsel %vm155_vm0, %v558_v49, 0.0  ;;  %v605_v20 = vsel %vm155_vm0, %v562_v16, 0.0  ;;  %v756_v63 = vcombine.low %v1294_v37, %v1300_v44  ;;  %v607_v2 = vsel %vm155_vm0, %v566_v40, 0.0  ;;  %v1473_v44 = vld [vmem:[#allocation8_spill] sm:$0xff]  ;;  %v1486_v49 = vld [vmem:[#allocation23_spill] sm:$0xff]  ;;  %v1488_v40 = vld [vmem:[#allocation13_spill] sm:$0xff] }
  0xfc   :  { %v606_v10 = vadd.f32 %v605_v20, %v604_v5  ;;  %v557_v19 = vunpack.c.l.bf16 %v541_v33  ;;  %v561_v56 = vunpack.c.l.bf16 %v543_v52  ;;  %v565_v55 = vunpack.c.l.bf16 %v545_v61  ;;  %v1476_v52 = vld [vmem:[#allocation9_spill] sm:$0xff] }
  0xfd   :  { %v609_v32 = vsel %vm155_vm0, %v570_v59, 0.0  ;;  %v611_v6 = vsel %vm155_vm0, %v574_v17, 0.0  ;;  %v758_v30 = vcombine.low %v1314_v9, %v850_v38  ;;  %v613_v28 = vsel %vm155_vm0, %v578_v18, 0.0  ;;  %v1479_v9 = vld [vmem:[#allocation10_spill] sm:$0xff]  ;;  %v1485_v38 = vld [vmem:[#allocation12_spill] sm:$0xff] }
  0xfe   :  { %v608_v26 = vadd.f32 %v607_v2, %v606_v10  ;;  %v569_v58 = vunpack.c.l.bf16 %v547_v53  ;;  %v589_v42 = vsel %vm155_vm0, %v557_v19, 0.0  ;;  %v590_v54 = vsel %vm155_vm0, %v561_v56, 0.0  ;;  %v1489_v59 = vld [vmem:[#allocation24_spill] sm:$0xff] }
  0xff   :  { %v615_v45 = vsel %vm155_vm0, %v582_v29, 0.0  ;;  %v573_v21 = vunpack.c.l.bf16 %v549_v8  ;;  %v591_v12 = vadd.f32 %v590_v54, %v589_v42  ;;  %v617_v14 = vsel %vm155_vm0, %v586_v3, 0.0  ;;  %v1482_v8 = vld [vmem:[#allocation11_spill] sm:$0xff] }
 0x100   :  { %v610_v7 = vadd.f32 %v609_v32, %v608_v26  ;;  %v577_v62 = vunpack.c.l.bf16 %v551_v1  ;;  %v581_v41 = vunpack.c.l.bf16 %v553_v36  ;;  %v592_v43 = vsel %vm155_vm0, %v565_v55, 0.0 }
 0x101   :  { %v593_v37 = vadd.f32 %v592_v43, %v591_v12  ;;  %v1475_v33 = vcombine.low %v1473_v44, %v1474_v50  ;;  %v1478_v61 = vcombine.low %v1476_v52, %v1477_v13  ;;  %v585_v4 = vunpack.c.l.bf16 %v1324_v48  ;;  %v657_v48 = vpop.permute.xlu1 %656 }
 0x102   :  { %v612_v57 = vadd.f32 %v611_v6, %v610_v7  ;;  %v594_v53 = vsel %vm155_vm0, %v569_v58, 0.0  ;;  %v1481_v51 = vcombine.low %v1479_v9, %v1480_v24  ;;  %v1484_v47 = vcombine.low %v1482_v8, %v1483_v34  ;;  %v652_v6 = vpop.permute.xlu0 %651 }
 0x103   :  { %v542_v35 = vmul.bf16 %v1475_v33, %v395_v23  ;;  %v544_v60 = vmul.bf16 %v1478_v61, %v402_v22  ;;  %v595_v36 = vadd.f32 %v594_v53, %v593_v37  ;;  %v596_v23 = vsel %vm155_vm0, %v573_v21, 0.0 }
 0x104   :  { %v546_v0 = vmul.bf16 %v1481_v51, %v409_v25  ;;  %v1355_v15 = vmul.bf16 %v1484_v47, %v416_v27  ;;  %v614_v1 = vadd.f32 %v613_v28, %v612_v57  ;;  %v1487_v22 = vcombine.low %v1485_v38, %v1486_v49 }
 0x105   :  { %v1490_v17 = vcombine.low %v1488_v40, %v1489_v59  ;;  %v559_v25 = vunpack.c.l.bf16 %v542_v35  ;;  %v563_v5 = vunpack.c.l.bf16 %v544_v60  ;;  %v597_v29 = vadd.f32 %v596_v23, %v595_v36  ;;  %v695_v58 = vpop.permute.xlu1 %694 }
 0x106   :  { %v1361_v16 = vmul.bf16 %v1487_v22, %v423_v39  ;;  %v567_v20 = vunpack.c.l.bf16 %v546_v0  ;;  %v616_v27 = vadd.f32 %v615_v45, %v614_v1  ;;  %v598_v3 = vsel %vm155_vm0, %v577_v62, 0.0  ;;  %v691_v37 = vpop.permute.xlu0 %690 }
 0x107   :  { %v1366_v18 = vmul.bf16 %v1490_v17, %v430_v46  ;;  %v600_v10 = vsel %vm155_vm0, %v581_v41, 0.0  ;;  %v1371_v2 = vmul.bf16 %v756_v63, %v1296_v11  ;;  %v571_v39 = vunpack.c.l.bf16 %v1355_v15 }
 0x108   :  { %v619_v19 = vsel %vm155_vm0, %v559_v25, 0.0  ;;  %v620_v56 = vsel %vm155_vm0, %v563_v5, 0.0  ;;  %v618_v46 = vadd.f32 %v617_v14, %v616_v27  ;;  %v599_v55 = vadd.f32 %v598_v3, %v597_v29 }
 0x109   :  { %v1377_v26 = vmul.bf16 %v758_v30, %v1298_v31  ;;  %v621_v32 = vadd.f32 %v620_v56, %v619_v19  ;;  %v602_v28 = vsel %vm155_vm0, %v585_v4, 0.0  ;;  %v575_v42 = vunpack.c.l.bf16 %v1361_v16  ;;  %v662_v17 = vpop.permute.xlu1 %661 }
 0x10a   :  { %v579_v11 = vunpack.c.l.bf16 %v1366_v18  ;;  %v622_v63 = vsel %vm155_vm0, %v567_v20, 0.0  ;;  %v670_v54 = vmul.f32 %v657_v48, %v618_v46  ;;  %v601_v7 = vadd.f32 %v600_v10, %v599_v55  ;;  %v699_v59 = vpop.permute.xlu0 %698 }
 0x10b   :  { %v706_v45 = vmul.f32 %v695_v58, %v618_v46  ;;  %v623_v21 = vadd.f32 %v622_v63, %v621_v32  ;;  %v583_v12 = vunpack.c.l.bf16 %v1371_v2  ;;  %v624_v31 = vsel %vm155_vm0, %v571_v39, 0.0 }
 0x10c   :  { %v560_v30 = vunpack.c.h.bf16 %v542_v35  ;;  %v564_v14 = vunpack.c.h.bf16 %v544_v60  ;;  %v603_v62 = vadd.f32 %v602_v28, %v601_v7  ;;  %v587_v41 = vunpack.c.l.bf16 %v1377_v26 }
 0x10d   :  { %v625_v43 = vadd.f32 %v624_v31, %v623_v21  ;;  %v674_v57 = vsel %vm155_vm0, %v670_v54, 0.0  ;;  %v626_v44 = vsel %vm155_vm0, %v575_v42, 0.0  ;;  %v628_v50 = vsel %vm155_vm0, %v579_v11, 0.0  ;;  %v667_v32 = vpop.permute.xlu1 %666 }
 0x10e   :  { %v568_v33 = vunpack.c.h.bf16 %v546_v0  ;;  %v669_v52 = vmul.f32 %v652_v6, %v603_v62  ;;  %v705_v13 = vmul.f32 %v691_v37, %v603_v62  ;;  %v710_v61 = vsel %vm155_vm0, %v706_v45, 0.0  ;;  %v703_v28 = vpop.permute.xlu0 %702 }
 0x10f   :  { %v627_v4 = vadd.f32 %v626_v44, %v625_v43  ;;  %v630_v35 = vsel %vm155_vm0, %v583_v12, 0.0  ;;  %v572_v60 = vunpack.c.h.bf16 %v1355_v15  ;;  %v634_v53 = vsel %vm155_vm0, %v560_v30, 0.0 }
 0x110   :  { %v635_v9 = vsel %vm155_vm0, %v564_v14, 0.0  ;;  %v673_v24 = vsel %vm155_vm0, %v669_v52, 0.0  ;;  %v709_v51 = vsel %vm155_vm0, %v705_v13, 0.0  ;;  %v576_v1 = vunpack.c.h.bf16 %v1361_v16 }
 0x111   :  { %v629_v8 = vadd.f32 %v628_v50, %v627_v4  ;;  %v636_v34 = vadd.f32 %v635_v9, %v634_v53  ;;  %v675_v0 = vadd.f32 %v674_v57, %v673_v24  ;;  %v711_v47 = vadd.f32 %v710_v61, %v709_v51 }
 0x112   :  { %v637_v36 = vsel %vm155_vm0, %v568_v33, 0.0  ;;  %v632_v15 = vsel %vm155_vm0, %v587_v41, 0.0  ;;  %v580_v49 = vunpack.c.h.bf16 %v1366_v18  ;;  %v639_v22 = vsel %vm155_vm0, %v572_v60, 0.0 }
 0x113   :  { %v631_v23 = vadd.f32 %v630_v35, %v629_v8  ;;  %v638_v38 = vadd.f32 %v637_v36, %v636_v34  ;;  %v584_v25 = vunpack.c.h.bf16 %v1371_v2  ;;  %v641_v5 = vsel %vm155_vm0, %v576_v1, 0.0 }
 0x114   :  { %v588_v29 = vunpack.c.h.bf16 %v1377_v26  ;;  %v643_v3 = vsel %vm155_vm0, %v580_v49, 0.0  ;;  %v687_v57 = vstv %s686_s0  ;;  %v723_v37 = vstv %s759_s2 }
 0x115   :  { %v633_v48 = vadd.f32 %v632_v15, %v631_v23  ;;  %v640_v40 = vadd.f32 %v639_v22, %v638_v38  ;;  %v645_v46 = vsel %vm155_vm0, %v584_v25, 0.0 }
 0x116   :  { %v647_v2 = vsel %vm155_vm0, %v588_v29, 0.0 }
 0x117   :  { %v707_v20 = vmul.f32 %v699_v59, %v633_v48  ;;  %v671_v16 = vmul.f32 %v662_v17, %v633_v48  ;;  %v642_v27 = vadd.f32 %v641_v5, %v640_v40 }
 0x119   :  { %v712_v10 = vsel %vm155_vm0, %v707_v20, 0.0  ;;  %v676_v18 = vsel %vm155_vm0, %v671_v16, 0.0  ;;  %v644_v39 = vadd.f32 %v643_v3, %v642_v27 }
 0x11a   :  { %v713_v19 = vadd.f32 %v712_v10, %v711_v47  ;;  %v677_v56 = vadd.f32 %v676_v18, %v675_v0 }
 0x11b   :  { %v646_v55 = vadd.f32 %v645_v46, %v644_v39 }
 0x11d   :  { %v648_v6 = vadd.f32 %v647_v2, %v646_v55 }
 0x11f   :  { %v708_v58 = vmul.f32 %v703_v28, %v648_v6  ;;  %v672_v42 = vmul.f32 %v667_v32, %v648_v6 }
 0x121   :  { %v714_v26 = vsel %vm155_vm0, %v708_v58, 0.0  ;;  %v678_v11 = vsel %vm155_vm0, %v672_v42, 0.0 }
 0x122   :  { %v715_v63 = vadd.f32 %v714_v26, %v713_v19  ;;  %v679_v54 = vadd.f32 %v678_v11, %v677_v56 }
 0x124   :  { %v716_v7 = vrot.slane %v715_v63, 4  ;;  %v680_v45 = vrot.slane %v679_v54, 4 }
 0x126   :  { %v717_v21 = vadd.f32 %v716_v7, %v715_v63  ;;  %v681_v12 = vadd.f32 %v680_v45, %v679_v54 }
 0x128   :  { %v718_v31 = vrot.slane %v717_v21, 2  ;;  %v682_v30 = vrot.slane %v681_v12, 2 }
 0x12a   :  { %v719_v14 = vadd.f32 %v718_v31, %v717_v21  ;;  %v683_v62 = vadd.f32 %v682_v30, %v681_v12 }
 0x12c   :  { %v684_v41 = vrot.slane %v683_v62, 1  ;;  %v720_v43 = vrot.slane %v719_v14, 1 }
 0x12e   :  { %v685_v44 = vadd.f32 %v684_v41, %v683_v62  ;;  %v721_v50 = vadd.f32 %v720_v43, %v719_v14 }
 0x130   :  { %v688_v33 = vadd.f32 %v687_v57, %v685_v44  ;;  %v724_v52 = vadd.f32 %v723_v37, %v721_v50 }
 0x132   :  { %726 = vst.msk [vmem:[#allocation5] sm:$0x1] %vm725_vm8, %v688_v33  ;;  %727 = vst.msk [vmem:[#allocation5 + $0x1] sm:$0x1] %vm725_vm8, %v724_v52 }
 0x133   :  { %874 = shalt.err (!%p871_p9)
}
 0x134   :  { %s875_s19 = scalar_lea.hbm %s1427_s4, 32 }
 0x135   :  { %p876_p10 = scmp.ne.s32.totalorder %s1427_s4, %s875_s19  ;;  %p879_p11 = scmp.lt.u32.totalorder %s875_s19, %s1427_s4 }
 0x137   :  { %p881_p12 = pnand %p879_p11, %p876_p10 }
 0x139   :  { %884 = shalt.err (!%p881_p12)
}
 0x13a   :  { %737 = dma.vmem_to_hbm [thread:$0]  %s735_s15, 32, %s1427_s4, [#allocation3]  }
 0x13b   :  { %887 = dma.done.wait [#allocation3], 32  }
 0x13c   :  { %888 = vsyncadd [#allocation3], 4294967264 }
 0x13d   :  { %741 = vsyncpa [#allocation3], 1 }
 0x13e   :  { %742 = vsyncpa [#allocation4], 1 }

</bundles_post_ra>
